<compile_context>
chip_gen: v5e
topology: v5e:2x2
jax: 0.10.0
libtpu: 0.0.40
codegen_flags: <defaults>
</compile_context>

<pallas_src>
import functools

import jax
import jax.numpy as jnp
import numpy as np
from jax.experimental import pallas as pl
from jax.experimental.pallas import tpu as pltpu


def lsa_kernel(x_ref, gamma_ref, beta_ref, wqkv_ref, wo_ref, bo_ref, o_ref, *,
               heads, dim_head, dim_true, approx_recip):
    block_b, n, dim_pad = x_ref.shape
    inner = heads * dim_head
    mxu_dtype = wqkv_ref.dtype            # MXU operand dtype (bf16 or f32)
    rows = block_b * n

    # Flatten the batch block to [rows, dim_pad] (sublane merge only).
    x = x_ref[...].reshape(rows, dim_pad)

    # --- LayerNorm (eps=1e-5, elementwise affine) over the TRUE feature width.
    # Padded lanes of x are zero, so sums over 128 lanes equal sums over the true
    # 32 lanes; use E[x^2] - mu^2 so the zero padding cannot corrupt the variance.
    inv_dim = jnp.float32(1.0 / dim_true)
    mu = jnp.sum(x, axis=-1, keepdims=True) * inv_dim
    ex2 = jnp.sum(x * x, axis=-1, keepdims=True) * inv_dim
    var = ex2 - mu * mu
    xn = (x - mu) * jax.lax.rsqrt(var + 1e-5) * gamma_ref[0] + beta_ref[0]
    xn_m = xn.astype(mxu_dtype)           # padded lanes stay 0 (gamma/beta padded = 0)

    # --- Fused QKV projection: one wide MXU matmul.  exp(temperature) was folded
    #     into the W_q columns by the wrapper, so no logit scaling is needed here.
    qkv = jnp.dot(xn_m, wqkv_ref[...], preferred_element_type=jnp.float32)
    qkv_m = qkv.reshape(block_b, n, 3 * inner).astype(mxu_dtype)

    # Diagonal mask: batch- and head-invariant, built once per step as (1, n, n).
    neg = jnp.float32(-1e30)              # large-but-safe; exp(neg - rowmax) == 0
    diag = (jax.lax.broadcasted_iota(jnp.int32, (1, n, n), 1)
            == jax.lax.broadcasted_iota(jnp.int32, (1, n, n), 2))

    # --- per-head attention (heads is small & static); q/k/v are static lane slices
    #     of the fused QKV result.  Logits contract the last axes of q and k (no
    #     explicit transpose), batched over the batch-block dim; f32 accumulation.
    outs = []
    for h in range(heads):
        q3 = qkv_m[:, :, h * dim_head:(h + 1) * dim_head]
        k3 = qkv_m[:, :, inner + h * dim_head:inner + (h + 1) * dim_head]
        v3 = qkv_m[:, :, 2 * inner + h * dim_head:2 * inner + (h + 1) * dim_head]

        dots = jax.lax.dot_general(
            q3, k3, (((2,), (2,)), ((0,), (0,))),
            preferred_element_type=jnp.float32)              # [block_b, n, n]
        dots = jnp.where(diag, neg, dots)
        dots = dots - jnp.max(dots, axis=-1, keepdims=True)
        e = jnp.exp(dots)
        denom = jnp.sum(e, axis=-1, keepdims=True)
        if approx_recip:
            attn = e * pl.reciprocal(denom, approx=True)     # EUP, not VPU divide
        else:
            attn = e / denom

        outs.append(jax.lax.dot_general(
            attn.astype(mxu_dtype), v3, (((2,), (1,)), ((0,), (0,))),
            preferred_element_type=jnp.float32))             # [block_b, n, d]

    # Head-major concat matches the original W_o layout -> ONE output projection.
    out = outs[0] if heads == 1 else jnp.concatenate(outs, axis=-1)
    out2 = out.reshape(rows, inner).astype(mxu_dtype)
    y = jnp.dot(out2, wo_ref[...], preferred_element_type=jnp.float32) + bo_ref[0]

    # Lane-dense (128-wide) unmasked store.  Dropout(0.0) is identity.
    o_ref[...] = y.reshape(block_b, n, dim_pad).astype(o_ref.dtype)


def _round_up(v, m):
    return ((v + m - 1) // m) * m


def _vmem_estimate(block_b, n, dim_pad, inner, heads, x_bytes=4, mxu_bytes=2,
                   out_bytes=4):
    """Conservative per-step VMEM estimate (blocks + weights + intermediates)."""
    rows = block_b * n
    est = 2 * rows * dim_pad * x_bytes            # x block (double-buffered)
    est += 2 * rows * dim_pad * out_bytes         # out block (double-buffered)
    est += 2 * (4 * inner * dim_pad) * mxu_bytes  # W_qkv + W_o (2 buffers each)
    est += 3 * 2 * dim_pad * 4                    # gamma / beta / bias
    est += 2 * rows * dim_pad * 4                 # xn (f32 + MXU-dtype copy)
    est += 2 * rows * 3 * inner * 4               # fused qkv (f32 + cast copy)
    est += 3 * block_b * n * n * 4                # dots / e / attn (one head live)
    est += 2 * rows * inner * 4                   # concatenated head outputs
    return est


def _pick_block_b(b, n, dim_pad, inner, heads, target_rows=1024,
                  vmem_budget=24 * 2 ** 20):
    """Largest divisor of b with (i) grid >= 2 when b >= 2 (v7x megacore),
    (ii) ~target_rows MXU rows per step, (iii) VMEM estimate within budget."""
    max_bb = b if b < 2 else max(1, b // 2)
    best = 1
    for cand in range(1, max_bb + 1):
        if b % cand:
            continue
        rows = cand * n
        if cand > 1 and rows > target_rows:
            continue
        if cand > 1 and _vmem_estimate(cand, n, dim_pad, inner, heads) > vmem_budget:
            continue
        best = cand
    return best


def lsa_forward(x, gamma, beta, wqkv, wo, bo, temperature, *, heads, dim_head,
                mxu_dtype=jnp.bfloat16, approx_recip=True, block_b=None,
                out_dtype=None):
    b, n, dim = x.shape
    inner = heads * dim_head
    assert wqkv.shape == (dim, 3 * inner) and wo.shape == (inner, dim)
    out_dtype = x.dtype if out_dtype is None else out_dtype   # bf16 also allowed

    # --- lane-dense padding of the feature dim (e.g. 32 -> 128).  Padded rows/cols
    #     are zero so they never leak into Q/K/V or the (sliced-off) output lanes.
    dim_pad = _round_up(max(dim, 128), 128)
    pad = dim_pad - dim
    x_p = jnp.pad(x, ((0, 0), (0, 0), (0, pad)))
    gamma_p = jnp.pad(gamma, ((0, 0), (0, pad)))
    beta_p = jnp.pad(beta, ((0, 0), (0, pad)))
    bo_p = jnp.pad(bo, ((0, 0), (0, pad)))

    # Fold exp(temperature) into W_q at trace time (outside the kernel).
    scale = jnp.exp(temperature[0]).astype(wqkv.dtype)
    wq, wk, wv = jnp.split(wqkv, 3, axis=-1)
    wqkv_scaled = jnp.concatenate([wq * scale, wk, wv], axis=-1)
    wqkv_p = jnp.pad(wqkv_scaled, ((0, pad), (0, 0))).astype(mxu_dtype)
    wo_p = jnp.pad(wo, ((0, 0), (0, pad))).astype(mxu_dtype)

    if block_b is None:
        block_b = _pick_block_b(b, n, dim_pad, inner, heads)
    assert b % block_b == 0
    grid = (b // block_b,)

    vmem_limit = int(min(64 * 2 ** 20,          # v7x physical VMEM per TC
                         max(32 * 2 ** 20,
                             2 * _vmem_estimate(block_b, n, dim_pad, inner, heads))))

    kernel = functools.partial(lsa_kernel, heads=heads, dim_head=dim_head,
                               dim_true=dim, approx_recip=approx_recip)
    out_p = pl.pallas_call(
        kernel,
        out_shape=jax.ShapeDtypeStruct((b, n, dim_pad), out_dtype),
        grid=grid,
        in_specs=[
            pl.BlockSpec((block_b, n, dim_pad), lambda i: (i, 0, 0)),   # x (padded)
            pl.BlockSpec((1, dim_pad), lambda i: (0, 0)),               # LN gamma
            pl.BlockSpec((1, dim_pad), lambda i: (0, 0)),               # LN beta
            pl.BlockSpec((dim_pad, 3 * inner), lambda i: (0, 0)),       # fused W_qkv
            pl.BlockSpec((inner, dim_pad), lambda i: (0, 0)),           # W_out
            pl.BlockSpec((1, dim_pad), lambda i: (0, 0)),               # b_out
        ],
        out_specs=pl.BlockSpec((block_b, n, dim_pad), lambda i: (i, 0, 0)),
        compiler_params=pltpu.CompilerParams(
            dimension_semantics=("parallel",),
            vmem_limit_bytes=vmem_limit),
    )(x_p, gamma_p, beta_p, wqkv_p, wo_p, bo_p)

    return out_p[..., :dim]


def lsa_reference(x, gamma, beta, wqkv, wo, bo, temperature, *, heads, dim_head):
    """Pure-JAX reference mirroring the PyTorch module (eval mode)."""
    inner = heads * dim_head
    mu = jnp.mean(x, axis=-1, keepdims=True)
    var = jnp.mean((x - mu) ** 2, axis=-1, keepdims=True)
    xn = (x - mu) / jnp.sqrt(var + 1e-5) * gamma[0] + beta[0]
    qkv = xn @ wqkv
    q, k, v = jnp.split(qkv, 3, axis=-1)

    def to_heads(t):
        b, n, _ = t.shape
        return t.reshape(b, n, heads, dim_head).transpose(0, 2, 1, 3)  # b h n d

    q, k, v = map(to_heads, (q, k, v))
    dots = jnp.einsum("bhnd,bhmd->bhnm", q, k) * jnp.exp(temperature[0])
    n = dots.shape[-1]
    mask = jnp.eye(n, dtype=bool)
    dots = jnp.where(mask, -jnp.finfo(jnp.float32).max, dots)
    attn = jax.nn.softmax(dots, axis=-1)
    out = jnp.einsum("bhnm,bhmd->bhnd", attn, v)
    out = out.transpose(0, 2, 1, 3).reshape(x.shape[0], x.shape[1], inner)
    return out @ wo + bo[0]


if __name__ == "__main__":
    B, N, DIM = 2, 8, 32
    HEADS, DIM_HEAD = 2, 8
    INNER = HEADS * DIM_HEAD

    key = jax.random.PRNGKey(0)
    kx, kqkv, kwo, kbo = jax.random.split(key, 4)

    x = jax.random.normal(kx, (B, N, DIM), dtype=jnp.float32)

    # Deterministic parameter init (PyTorch-Linear-style uniform ranges)
    gamma = jnp.ones((1, DIM), dtype=jnp.float32)
    beta = jnp.zeros((1, DIM), dtype=jnp.float32)
    lim_qkv = 1.0 / np.sqrt(DIM)
    wqkv = jax.random.uniform(kqkv, (DIM, 3 * INNER), jnp.float32, -lim_qkv, lim_qkv)
    lim_o = 1.0 / np.sqrt(INNER)
    wo = jax.random.uniform(kwo, (INNER, DIM), jnp.float32, -lim_o, lim_o)
    bo = jax.random.uniform(kbo, (1, DIM), jnp.float32, -lim_o, lim_o)
    temperature = jnp.array([np.log(DIM_HEAD ** (-0.5))], dtype=jnp.float32)

    ref = lsa_reference(x, gamma, beta, wqkv, wo, bo, temperature,
                        heads=HEADS, dim_head=DIM_HEAD)

    # Strict-semantics check: f32 MXU operands, exact softmax division.
    out_f32 = lsa_forward(x, gamma, beta, wqkv, wo, bo, temperature,
                          heads=HEADS, dim_head=DIM_HEAD,
                          mxu_dtype=jnp.float32, approx_recip=False)
    out_f32 = jax.block_until_ready(out_f32)
    np.testing.assert_allclose(np.asarray(out_f32), np.asarray(ref),
                               rtol=1e-4, atol=1e-4)

    # Fast path (v6e/v7x): bf16 MXU operands, f32 accumulation, EUP approx reciprocal.
    out_bf16 = lsa_forward(x, gamma, beta, wqkv, wo, bo, temperature,
                           heads=HEADS, dim_head=DIM_HEAD,
                           mxu_dtype=jnp.bfloat16, approx_recip=True)
    out_bf16 = jax.block_until_ready(out_bf16)
    np.testing.assert_allclose(np.asarray(out_bf16), np.asarray(ref),
                               rtol=3e-2, atol=3e-2)

    print("KERNEL_OK")
</pallas_src>

<mosaic_0001>
module attributes {stable_mosaic.version = 11 : i64} {
  func.func @lsa_kernel(%arg0: i32, %arg1: memref<1x8x128xf32, #tpu.memory_space<vmem>>, %arg2: memref<1x128xf32, #tpu.memory_space<vmem>>, %arg3: memref<1x128xf32, #tpu.memory_space<vmem>>, %arg4: memref<128x48xf32, #tpu.memory_space<vmem>>, %arg5: memref<16x128xf32, #tpu.memory_space<vmem>>, %arg6: memref<1x128xf32, #tpu.memory_space<vmem>>, %arg7: memref<1x8x128xf32, #tpu.memory_space<vmem>>) attributes {dimension_semantics = [#tpu.dimension_semantics<parallel>], iteration_bounds = array<i64: 2>, scalar_prefetch = 0 : i64, scratch_operands = 0 : i64, tpu.core_type = #tpu.core_type<tc>, window_params = [{transform_indices = @transform_0, window_bounds = array<i64: 1, 8, 128>}, {pipeline_mode = #tpu.pipeline_mode<synchronous>, transform_indices = @transform_1, window_bounds = array<i64: 1, 128>}, {pipeline_mode = #tpu.pipeline_mode<synchronous>, transform_indices = @transform_2, window_bounds = array<i64: 1, 128>}, {pipeline_mode = #tpu.pipeline_mode<synchronous>, transform_indices = @transform_3, window_bounds = array<i64: 128, 48>}, {pipeline_mode = #tpu.pipeline_mode<synchronous>, transform_indices = @transform_4, window_bounds = array<i64: 16, 128>}, {pipeline_mode = #tpu.pipeline_mode<synchronous>, transform_indices = @transform_5, window_bounds = array<i64: 1, 128>}, {transform_indices = @transform_6, window_bounds = array<i64: 1, 8, 128>}]} {
    %c0 = arith.constant 0 : index
    %c0_0 = arith.constant 0 : index
    %c0_1 = arith.constant 0 : index
    %0 = vector.load %arg1[%c0, %c0_0, %c0_1] : memref<1x8x128xf32, #tpu.memory_space<vmem>>, vector<1x8x128xf32>
    %1 = vector.shape_cast %0 : vector<1x8x128xf32> to vector<8x128xf32>
    %cst = arith.constant dense<0.000000e+00> : vector<8xf32>
    %2 = vector.multi_reduction <add>, %1, %cst [1] : vector<8x128xf32> to vector<8xf32>
    %3 = vector.shape_cast %2 : vector<8xf32> to vector<8x1xf32>
    %cst_2 = arith.constant 3.125000e-02 : f32
    %4 = vector.broadcast %cst_2 : f32 to vector<8x1xf32>
    %5 = arith.mulf %3, %4 : vector<8x1xf32>
    %6 = arith.mulf %1, %1 : vector<8x128xf32>
    %cst_3 = arith.constant dense<0.000000e+00> : vector<8xf32>
    %7 = vector.multi_reduction <add>, %6, %cst_3 [1] : vector<8x128xf32> to vector<8xf32>
    %8 = vector.shape_cast %7 : vector<8xf32> to vector<8x1xf32>
    %cst_4 = arith.constant 3.125000e-02 : f32
    %9 = vector.broadcast %cst_4 : f32 to vector<8x1xf32>
    %10 = arith.mulf %8, %9 : vector<8x1xf32>
    %11 = arith.mulf %5, %5 : vector<8x1xf32>
    %12 = arith.subf %10, %11 : vector<8x1xf32>
    %13 = vector.broadcast %5 : vector<8x1xf32> to vector<8x128xf32>
    %14 = arith.subf %1, %13 : vector<8x128xf32>
    %cst_5 = arith.constant 9.99999974E-6 : f32
    %15 = vector.broadcast %cst_5 : f32 to vector<8x1xf32>
    %16 = arith.addf %12, %15 : vector<8x1xf32>
    %17 = math.rsqrt %16 : vector<8x1xf32>
    %18 = vector.broadcast %17 : vector<8x1xf32> to vector<8x128xf32>
    %19 = arith.mulf %14, %18 : vector<8x128xf32>
    %c0_6 = arith.constant 0 : index
    %c0_7 = arith.constant 0 : index
    %20 = vector.load %arg2[%c0_6, %c0_7] : memref<1x128xf32, #tpu.memory_space<vmem>>, vector<1x128xf32>
    %21 = vector.shape_cast %20 : vector<1x128xf32> to vector<128xf32>
    %22 = vector.shape_cast %21 : vector<128xf32> to vector<1x128xf32>
    %23 = vector.broadcast %22 : vector<1x128xf32> to vector<8x128xf32>
    %24 = arith.mulf %19, %23 : vector<8x128xf32>
    %c0_8 = arith.constant 0 : index
    %c0_9 = arith.constant 0 : index
    %25 = vector.load %arg3[%c0_8, %c0_9] : memref<1x128xf32, #tpu.memory_space<vmem>>, vector<1x128xf32>
    %26 = vector.shape_cast %25 : vector<1x128xf32> to vector<128xf32>
    %27 = vector.shape_cast %26 : vector<128xf32> to vector<1x128xf32>
    %28 = vector.broadcast %27 : vector<1x128xf32> to vector<8x128xf32>
    %29 = arith.addf %24, %28 : vector<8x128xf32>
    %c0_10 = arith.constant 0 : index
    %c0_11 = arith.constant 0 : index
    %30 = vector.load %arg4[%c0_10, %c0_11] : memref<128x48xf32, #tpu.memory_space<vmem>>, vector<128x48xf32>
    %cst_12 = arith.constant dense<0.000000e+00> : vector<8x48xf32>
    %31 = tpu.matmul %29, %30, %cst_12 {dimension_numbers = #tpu.dot_dimension_numbers<[1], [0], [0], [1], [0, 0, 1, 1], [], []>} : vector<8x128xf32>, vector<128x48xf32>, vector<8x48xf32> -> vector<8x48xf32>
    %32 = vector.shape_cast %31 : vector<8x48xf32> to vector<1x8x48xf32>
    %33 = tpu.iota {dimensions = array<i32: 1>} : vector<1x8x8xi32>
    %34 = tpu.iota {dimensions = array<i32: 2>} : vector<1x8x8xi32>
    %35 = arith.cmpi eq, %33, %34 : vector<1x8x8xi32>
    %36 = vector.extract_strided_slice %32 {offsets = [0, 0, 0], sizes = [1, 8, 8], strides = [1, 1, 1]} : vector<1x8x48xf32> to vector<1x8x8xf32>
    %37 = vector.extract_strided_slice %32 {offsets = [0, 0, 16], sizes = [1, 8, 8], strides = [1, 1, 1]} : vector<1x8x48xf32> to vector<1x8x8xf32>
    %38 = vector.extract_strided_slice %32 {offsets = [0, 0, 32], sizes = [1, 8, 8], strides = [1, 1, 1]} : vector<1x8x48xf32> to vector<1x8x8xf32>
    %cst_13 = arith.constant dense<0.000000e+00> : vector<1x8x8xf32>
    %39 = tpu.matmul %36, %37, %cst_13 {dimension_numbers = #tpu.dot_dimension_numbers<[2], [2], [1], [1], [0, 0, 0, 1, 1, 1], [0], [0]>} : vector<1x8x8xf32>, vector<1x8x8xf32>, vector<1x8x8xf32> -> vector<1x8x8xf32>
    %cst_14 = arith.constant -1.000000e+30 : f32
    %40 = vector.broadcast %cst_14 : f32 to vector<1x8x8xf32>
    %41 = arith.select %35, %40, %39 : vector<1x8x8xi1>, vector<1x8x8xf32>
    %cst_15 = arith.constant dense<0xFF800000> : vector<1x8xf32>
    %42 = vector.multi_reduction <maximumf>, %41, %cst_15 [2] : vector<1x8x8xf32> to vector<1x8xf32>
    %43 = vector.shape_cast %42 : vector<1x8xf32> to vector<1x8x1xf32>
    %44 = vector.broadcast %43 : vector<1x8x1xf32> to vector<1x8x8xf32>
    %45 = arith.subf %41, %44 : vector<1x8x8xf32>
    %46 = math.exp %45 : vector<1x8x8xf32>
    %cst_16 = arith.constant dense<0.000000e+00> : vector<1x8xf32>
    %47 = vector.multi_reduction <add>, %46, %cst_16 [2] : vector<1x8x8xf32> to vector<1x8xf32>
    %48 = vector.shape_cast %47 : vector<1x8xf32> to vector<1x8x1xf32>
    %49 = vector.broadcast %48 : vector<1x8x1xf32> to vector<1x8x8xf32>
    %50 = arith.divf %46, %49 : vector<1x8x8xf32>
    %cst_17 = arith.constant dense<0.000000e+00> : vector<1x8x8xf32>
    %51 = tpu.matmul %50, %38, %cst_17 {dimension_numbers = #tpu.dot_dimension_numbers<[2], [1], [1], [2], [0, 0, 0, 1, 1, 2], [0], [0]>} : vector<1x8x8xf32>, vector<1x8x8xf32>, vector<1x8x8xf32> -> vector<1x8x8xf32>
    %52 = vector.extract_strided_slice %32 {offsets = [0, 0, 8], sizes = [1, 8, 8], strides = [1, 1, 1]} : vector<1x8x48xf32> to vector<1x8x8xf32>
    %53 = vector.extract_strided_slice %32 {offsets = [0, 0, 24], sizes = [1, 8, 8], strides = [1, 1, 1]} : vector<1x8x48xf32> to vector<1x8x8xf32>
    %54 = vector.extract_strided_slice %32 {offsets = [0, 0, 40], sizes = [1, 8, 8], strides = [1, 1, 1]} : vector<1x8x48xf32> to vector<1x8x8xf32>
    %cst_18 = arith.constant dense<0.000000e+00> : vector<1x8x8xf32>
    %55 = tpu.matmul %52, %53, %cst_18 {dimension_numbers = #tpu.dot_dimension_numbers<[2], [2], [1], [1], [0, 0, 0, 1, 1, 1], [0], [0]>} : vector<1x8x8xf32>, vector<1x8x8xf32>, vector<1x8x8xf32> -> vector<1x8x8xf32>
    %cst_19 = arith.constant -1.000000e+30 : f32
    %56 = vector.broadcast %cst_19 : f32 to vector<1x8x8xf32>
    %57 = arith.select %35, %56, %55 : vector<1x8x8xi1>, vector<1x8x8xf32>
    %cst_20 = arith.constant dense<0xFF800000> : vector<1x8xf32>
    %58 = vector.multi_reduction <maximumf>, %57, %cst_20 [2] : vector<1x8x8xf32> to vector<1x8xf32>
    %59 = vector.shape_cast %58 : vector<1x8xf32> to vector<1x8x1xf32>
    %60 = vector.broadcast %59 : vector<1x8x1xf32> to vector<1x8x8xf32>
    %61 = arith.subf %57, %60 : vector<1x8x8xf32>
    %62 = math.exp %61 : vector<1x8x8xf32>
    %cst_21 = arith.constant dense<0.000000e+00> : vector<1x8xf32>
    %63 = vector.multi_reduction <add>, %62, %cst_21 [2] : vector<1x8x8xf32> to vector<1x8xf32>
    %64 = vector.shape_cast %63 : vector<1x8xf32> to vector<1x8x1xf32>
    %65 = vector.broadcast %64 : vector<1x8x1xf32> to vector<1x8x8xf32>
    %66 = arith.divf %62, %65 : vector<1x8x8xf32>
    %cst_22 = arith.constant dense<0.000000e+00> : vector<1x8x8xf32>
    %67 = tpu.matmul %66, %54, %cst_22 {dimension_numbers = #tpu.dot_dimension_numbers<[2], [1], [1], [2], [0, 0, 0, 1, 1, 2], [0], [0]>} : vector<1x8x8xf32>, vector<1x8x8xf32>, vector<1x8x8xf32> -> vector<1x8x8xf32>
    %68 = tpu.concatenate %51, %67 in 2 : vector<1x8x8xf32>, vector<1x8x8xf32> -> vector<1x8x16xf32>
    %69 = vector.shape_cast %68 : vector<1x8x16xf32> to vector<8x16xf32>
    %c0_23 = arith.constant 0 : index
    %c0_24 = arith.constant 0 : index
    %70 = vector.load %arg5[%c0_23, %c0_24] : memref<16x128xf32, #tpu.memory_space<vmem>>, vector<16x128xf32>
    %cst_25 = arith.constant dense<0.000000e+00> : vector<8x128xf32>
    %71 = tpu.matmul %69, %70, %cst_25 {dimension_numbers = #tpu.dot_dimension_numbers<[1], [0], [0], [1], [0, 0, 1, 1], [], []>} : vector<8x16xf32>, vector<16x128xf32>, vector<8x128xf32> -> vector<8x128xf32>
    %c0_26 = arith.constant 0 : index
    %c0_27 = arith.constant 0 : index
    %72 = vector.load %arg6[%c0_26, %c0_27] : memref<1x128xf32, #tpu.memory_space<vmem>>, vector<1x128xf32>
    %73 = vector.shape_cast %72 : vector<1x128xf32> to vector<128xf32>
    %74 = vector.shape_cast %73 : vector<128xf32> to vector<1x128xf32>
    %75 = vector.broadcast %74 : vector<1x128xf32> to vector<8x128xf32>
    %76 = arith.addf %71, %75 : vector<8x128xf32>
    %77 = vector.shape_cast %76 : vector<8x128xf32> to vector<1x8x128xf32>
    %c0_28 = arith.constant 0 : index
    %c0_29 = arith.constant 0 : index
    %c0_30 = arith.constant 0 : index
    %78 = vector.load %arg7[%c0_28, %c0_29, %c0_30] : memref<1x8x128xf32, #tpu.memory_space<vmem>>, vector<1x8x128xf32>
    tpu.vector_store %arg7[%c0_28, %c0_29, %c0_30], %77 {strides = array<i32>} : memref<1x8x128xf32, #tpu.memory_space<vmem>>, vector<1x8x128xf32>,
    return
  }
  func.func @transform_0(%arg0: i32) -> (i32, i32, i32) {
    %c0_i32 = arith.constant 0 : i32
    %c0_i32_0 = arith.constant 0 : i32
    %c0_i32_1 = arith.constant 0 : i32
    return %arg0, %c0_i32, %c0_i32_0 : i32, i32, i32
  }
  func.func @transform_1(%arg0: i32) -> (i32, i32) {
    %c0_i32 = arith.constant 0 : i32
    %c0_i32_0 = arith.constant 0 : i32
    %c0_i32_1 = arith.constant 0 : i32
    return %c0_i32, %c0_i32_0 : i32, i32
  }
  func.func @transform_2(%arg0: i32) -> (i32, i32) {
    %c0_i32 = arith.constant 0 : i32
    %c0_i32_0 = arith.constant 0 : i32
    %c0_i32_1 = arith.constant 0 : i32
    return %c0_i32, %c0_i32_0 : i32, i32
  }
  func.func @transform_3(%arg0: i32) -> (i32, i32) {
    %c0_i32 = arith.constant 0 : i32
    %c0_i32_0 = arith.constant 0 : i32
    %c0_i32_1 = arith.constant 0 : i32
    return %c0_i32, %c0_i32_0 : i32, i32
  }
  func.func @transform_4(%arg0: i32) -> (i32, i32) {
    %c0_i32 = arith.constant 0 : i32
    %c0_i32_0 = arith.constant 0 : i32
    %c0_i32_1 = arith.constant 0 : i32
    return %c0_i32, %c0_i32_0 : i32, i32
  }
  func.func @transform_5(%arg0: i32) -> (i32, i32) {
    %c0_i32 = arith.constant 0 : i32
    %c0_i32_0 = arith.constant 0 : i32
    %c0_i32_1 = arith.constant 0 : i32
    return %c0_i32, %c0_i32_0 : i32, i32
  }
  func.func @transform_6(%arg0: i32) -> (i32, i32, i32) {
    %c0_i32 = arith.constant 0 : i32
    %c0_i32_0 = arith.constant 0 : i32
    %c0_i32_1 = arith.constant 0 : i32
    return %arg0, %c0_i32, %c0_i32_0 : i32, i32, i32
  }
}

</mosaic_0001>

<bundles_post_ra>
// kernel: tpu_custom_call.1
= control target key start
LH: loop header
LB: loop body
LE: loop exit
PB: predicated region body
PF: predicated region fallthrough
CT: control target
= control target key end

     0   :  { %11 = vsyncpa [#allocation3], 0  ;;  %s929_s0 = inlined_call_operand.vmem [shape: f32[2,8,128], index: 0, kind: input, shape index: {}]   ;;  %s930_s1 = inlined_call_operand.vmem [shape: f32[1,128], index: 1, kind: input, shape index: {}]   ;;  %s931_s2 = inlined_call_operand.vmem [shape: f32[1,128], index: 2, kind: input, shape index: {}]   ;;  %s932_s3 = inlined_call_operand.vmem [shape: f32[128,48], index: 3, kind: input, shape index: {}]   ;;  %s933_s4 = inlined_call_operand.vmem [shape: f32[16,128], index: 4, kind: input, shape index: {}]   ;;  %s934_s5 = inlined_call_operand.vmem [shape: f32[1,128], index: 5, kind: input, shape index: {}]   ;;  %s935_s6 = inlined_call_operand.hbm [shape: f32[2,8,128], index: 6, kind: output, shape index: {}]  }
   0x1   :  { %13 = vsyncpa [#allocation3 + $0x1], 0  ;;  %s770_s21 = smov 0   ;;  %s772_s22 = smov 0  }
   0x2   :  { %s774_s23 = smov 0   ;;  %s776_s24 = smov 0  }
   0x3 LB: > { %s791_s25 = sadd.s32 4294967295, %s727_s24   ;;  %s590_s26 = sadd.s32 4294967294, %s727_s24   ;;  %s727_s24 = sphi %s776_s24, %s941_s24   ;;  %s723_s23 = sphi %s774_s23, %s940_s23   ;;  %s719_s22 = sphi %s772_s22, %s939_s22   ;;  %s715_s21 = sphi %s770_s21, %s938_s21  }
   0x4   : > { %s795_s27 = sadd.s32 1, %s727_s24   ;;  %s157_s28 = sadd.s32 1, %s723_s23 }
   0x5   : > { %s154_s29 = ssub.s32 %s727_s24, %s795_s27  ;;  %p167_p0 = scmp.ne.s32.totalorder %s723_s23, %s719_s22 }
   0x6   : > { %p155_p1 = scmp.eq.s32.totalorder %s154_s29, 0  ;;  %p168_p2 = scmp.eq.s32.totalorder %s791_s25, 1 }
   0x7   : > { %p173_p3 = scmp.ne.s32.totalorder %s719_s22, %s715_s21  ;;  %p174_p4 = scmp.eq.s32.totalorder %s590_s26, 1 }
   0x8   : > { %s806_s30 = scalar_select %p155_p1, %s723_s23, %s157_s28  }
   0x9   : > { %p808_p5 = por %p168_p2, %p167_p0  ;;  %p812_p6 = por %p174_p4, %p173_p3 }
   0xa   : > { %p593_p7 = scmp.ge.s32.totalorder %s727_s24, 1  ;;  %p214_p8 = scmp.lt.s32.totalorder %s727_s24, 3 }
   0xc   : > { %p215_p9 = pnand %p593_p7, %p214_p8 }
   0xd   : > { %p243_p10 = scmp.lt.s32.totalorder (!%p215_p9), %s791_s25, 1  ;;  %s729_s20 = smov (!%p215_p9), 120  }
   0xe   : > { %218 = sbr.rel (%p215_p9) target bundleno = 1215 (0x4bf), region = 44  ;;  %s730_s26 = smov (!%p215_p9), 112  }
   0xf   : > { %s731_s28 = smov (!%p215_p9), 104   ;;  %s732_s29 = smov (!%p215_p9), 88  }
  0x10   : > { %s734_s14 = smov (!%p215_p9), 8   ;;  %s240_s15 = sand.u32 (!%p215_p9), 1, %s719_s22  }
  0x11   : > { %s594_s16 = sshll.u32 (!%p215_p9), %s240_s15, 3  ;;  %s604_s17 = sshll.u32 (!%p215_p9), %s791_s25, 3 }
  0x12   : > { %s516_s11 = scalar_lea.sflag (!%p215_p9), [#allocation3], %s240_s15 }
  0x13   : > { %s244_s9 = scalar_select %p243_p10, %s791_s25, 1  ;;  %v295_v2 = vld [vmem:[%s932_s3 + $0x78] sm:$0xff]  ;;  %v294_v3 = vld [vmem:[%s932_s3 + $0x70] sm:$0xff]  ;;  %v293_v4 = vld [vmem:[%s932_s3 + $0x68] sm:$0xff]  ;;  %vm324_vm3 = vcmask 64512   ;;  %v316_v42 = vlaneseq  ;;  %vm490_vm13 = vcmask 130048  }
  0x14   : > { %296 = vmatpush.msra.mxu0 %v295_v2  ;;  %v292_v5 = vld [vmem:[%s932_s3 + $0x60] sm:$0xff]  ;;  %v291_v6 = vld [vmem:[%s932_s3 + $0x58] sm:$0xff]  ;;  %v290_v7 = vld [vmem:[%s932_s3 + $0x50] sm:$0xff] }
  0x15   : > { %s595_s10 = sshll.u32 %s244_s9, 3  ;;  %v289_v8 = vld [vmem:[%s932_s3 + $0x48] sm:$0xff]  ;;  %v288_v9 = vld [vmem:[%s932_s3 + $0x40] sm:$0xff]  ;;  %v287_v10 = vld [vmem:[%s932_s3 + $0x38] sm:$0xff]  ;;  %v317_v43 = vshrl.u32 %v316_v42, 7  ;;  %v319_v44 = vand.u32 127, %v316_v42 }
  0x16   : > { %s246_s13 = scalar_lea.vmem %s929_s0, %s595_s10  ;;  %297 = vmatpush.msra.mxu0 %v294_v3  ;;  %v286_v11 = vld [vmem:[%s932_s3 + $0x30] sm:$0xff]  ;;  %v285_v12 = vld [vmem:[%s932_s3 + $0x28] sm:$0xff]  ;;  %v284_v13 = vld [vmem:[%s932_s3 + $0x20] sm:$0xff]  ;;  %s733_s9 = smov 96  }
  0x17   : > { %v247_v0 = vld [vmem:[%s246_s13] sm:$0xff]  ;;  %v283_v14 = vld [vmem:[%s932_s3 + $0x18] sm:$0xff]  ;;  %v282_v15 = vld [vmem:[%s932_s3 + $0x10] sm:$0xff]  ;;  %vm320_vm4 = vcmp.eq.s32.totalorder %v317_v43, %v319_v44 }
  0x18   : > { %248 = vadd.xlane.f32.xlu0 %v247_v0  ;;  %v251_v1 = vmul.f32 %v247_v0, %v247_v0  ;;  %298 = vmatpush.msra.mxu0 %v293_v4  ;;  %v281_v17 = vld [vmem:[%s932_s3 + $0x8] sm:$0xff]  ;;  %v280_v18 = vld [vmem:[%s932_s3] sm:$0xff] }
  0x19   : > { %v652_v32 = vld [vmem:[%s930_s1] ss:$0 sm:$0xff] }
  0x1a   : > { %299 = vmatpush.msra.mxu0 %v292_v5  ;;  %v653_v35 = vld [vmem:[%s931_s2] ss:$0 sm:$0xff] }
  0x1c   : > { %300 = vmatpush.msra.mxu0 %v291_v6 }
  0x1e   : > { %301 = vmatpush.msra.mxu0 %v290_v7 }
  0x20   : > { %252 = vadd.xlane.f32.xlu0 %v251_v1  ;;  %302 = vmatpush.msra.mxu0 %v289_v8 }
  0x22   : > { %303 = vmatpush.msra.mxu0 %v288_v9 }
  0x24   : > { %304 = vmatpush.msra.mxu0 %v287_v10 }
  0x26   : > { %305 = vmatpush.msra.mxu0 %v286_v11 }
  0x28   : > { %306 = vmatpush.msra.mxu0 %v285_v12 }
  0x2a   : > { %307 = vmatpush.msra.mxu0 %v284_v13 }
  0x2c   : > { %308 = vmatpush.msra.mxu0 %v283_v14 }
  0x2e   : > { %309 = vmatpush.msra.mxu0 %v282_v15 }
  0x30   : > { %310 = vmatpush.msra.mxu0 %v281_v17 }
  0x32   : > { %311 = vmatpush.msra.mxu0 %v280_v18 }
  0x8b   : > { %v249_v16 = vpop.xlane.xlu0 %248 }
  0x8c   : > { %v250_v19 = vmul.f32 0.03125, %v249_v16 }
  0x8e   : > { %v255_v21 = vmul.f32 %v250_v19, %v250_v19  ;;  %v257_v31 = vsub.f32 %v247_v0, %v250_v19 }
  0x93   : > { %v253_v20 = vpop.xlane.xlu0 %252 }
  0x94   : > { %v254_v22 = vmul.f32 0.03125, %v253_v20 }
  0x96   : > { %v256_v23 = vsub.f32 %v254_v22, %v255_v21 }
  0x98   : > { %v258_v24 = vadd.f32 1e-05, %v256_v23  ;;  %v485_v23 = vld [vmem:[%s933_s4 + $0x8] sm:$0xff] }
  0x9a   : > { %655 = vrsqrt.f32 %v258_v24  ;;  %vm265_vm1 = vweird.f32 %v258_v24 }
  0xa0   : > { %v656_v25 = vpop.eup %655 }
  0xa1   : > { %v260_v26 = vmul.f32 %v656_v25, %v258_v24  ;;  %vm266_vm0 = vweird.f32 %v656_v25  ;;  %v484_v24 = vld [vmem:[%s933_s4] sm:$0xff] }
  0xa2   : > { %vm267_vm2 = vmor %vm265_vm1, %vm266_vm0 }
  0xa3   : > { %v261_v27 = vmul.f32 %v656_v25, %v260_v26 }
  0xa5   : > { %v262_v28 = vmul.f32 0.5, %v261_v27 }
  0xa7   : > { %v263_v29 = vsub.f32 1.5, %v262_v28 }
  0xa9   : > { %v264_v30 = vmul.f32 %v656_v25, %v263_v29  ;;  %v654_v29 = vld [vmem:[%s934_s5] ss:$0 sm:$0xff] }
  0xab   : > { %v268_v33 = vsel %vm267_vm2, %v656_v25, %v264_v30 }
  0xac   : > { %v269_v34 = vmul.f32 %v268_v33, %v257_v31 }
  0xae   : > { %v274_v36 = vmul.f32 %v652_v32, %v269_v34 }
  0xb0   : > { %v279_v37 = vadd.f32 %v653_v35, %v274_v36 }
  0xb2   : > { %312 = vmatmul.f32.vlgmr.msra.gmra.mxu0 %v279_v37 }
 0x12f   : > { %v313_v38 = vpop.f32.mrf.mxu0 }
 0x130   : > { %400 = vrot.lane.b32.xlu2 %v313_v38, %s729_s20  ;;  %322 = vrot.lane.b32.xlu1 %v313_v38, %s730_s26  ;;  %s526_s20 = scalar_lea.hbm %s935_s6, %s604_s17  ;;  %s685_s17 = scalar_lea.hbm %s935_s6, 16 }
 0x131   : > { %s530_s10 = sshll.u32 %s526_s20, 4  ;;  %s531_s10 = int_to_ptr.hbm [resolvable:$true] %s530_s10 }
 0x132   : > { %s679_s12 = sshra.s32 %s531_s10, 4  ;;  %s680_s12 = int_to_ptr.hbm [resolvable:$true] %s679_s12 }
 0x133   : > { %s681_s25 = scalar_lea.hbm %s680_s12, 8  ;;  %p686_p0 = scmp.lt.s32.totalorder %s680_s12, %s935_s6 }
 0x134   : > { %p682_p11 = scmp.ne.s32.totalorder %s680_s12, %s681_s25  ;;  %p687_p1 = scmp.lt.s32.totalorder %s685_s17, %s681_s25 }
 0x136   : > { %p683_p12 = pnand %p682_p11, %p808_p5  ;;  %p688_p2 = por %p687_p1, %p686_p0 }
 0x138   : > { %402 = vrot.lane.b32.xlu1 %v313_v38, %s731_s28  ;;  %p684_p13 = pneg %p683_p12 }
 0x13a   : > { %p689_p3 = pnand %p688_p2, %p684_p13 }
 0x18a   : > { %v401_v41 = vpop.permute.xlu2 %400 }
 0x1a2   : > { %v323_v39 = vpop.permute.xlu1 %322 }
 0x1a3   : > { %596 = vmatpush.xpose.msk.msra.mxu1 %vm324_vm3, %v323_v39 }
 0x1a6   : > { %597 = vmatmul.msk.f32.vlgmr.msra.gmra.mxu1 %vm324_vm3, %v313_v38 }
 0x1a7   : > { %508 = vmatpush.msrb.mxu1 %v485_v23 }
 0x1a9   : > { %509 = vmatpush.msrb.mxu1 %v484_v24 }
 0x1aa   : > { %v403_v40 = vpop.permute.xlu1 %402 }
 0x1ab   : > { %599 = vmatpush.xpose.msk.msra.mxu3 %vm324_vm3, %v403_v40 }
 0x1ae   : > { %600 = vmatmul.msk.f32.vlgmr.msra.gmra.mxu3 %vm324_vm3, %v401_v41 }
 0x223   : > { %v346_v45 = vpop.f32.mrf.mxu1 }
 0x224   : > { %v349_v46 = vsel %vm320_vm4, -1e+30, %v346_v45 }
 0x225   : > { %v350_v47 = vsel %vm324_vm3, %v349_v46, -inf }
 0x226   : > { %351 = vmax.xlane.f32.xlu2 %v350_v47 }
 0x231   : > { %v425_v48 = vpop.f32.mrf.mxu3 }
 0x232   : > { %v428_v49 = vsel %vm320_vm4, -1e+30, %v425_v48 }
 0x233   : > { %v429_v50 = vsel %vm324_vm3, %v428_v49, -inf }
 0x234   : > { %430 = vmax.xlane.f32.xlu0 %v429_v50 }
 0x23e   : > { %453 = vrot.lane.b32.xlu2 %v313_v38, %s732_s29  ;;  %s242_s29 = scalar_lea.vmem [#allocation2], %s594_s16 }
 0x299   : > { %v352_v51 = vpop.xlane.xlu2 %351 }
 0x29a   : > { %v353_v52 = vsub.f32 %v349_v46, %v352_v51 }
 0x29c   : > { %v354_v53 = vmul.f32 1.442695, %v353_v52 }
 0x29e   : > { %657 = vpow2.f32 %v354_v53 }
 0x2a1   : > { %v454_v18 = vpop.permute.xlu2 %453 }
 0x2a4   : > { %v658_v54 = vpop.eup %657 }
 0x2a5   : > { %v356_v55 = vsel %vm324_vm3, %v658_v54, 0.0 }
 0x2a6   : > { %357 = vadd.xlane.f32.xlu1 %v356_v55 }
 0x2a7   : > { %v431_v56 = vpop.xlane.xlu0 %430 }
 0x2a8   : > { %v432_v57 = vsub.f32 %v428_v49, %v431_v56 }
 0x2aa   : > { %v433_v58 = vmul.f32 1.442695, %v432_v57 }
 0x2ac   : > { %659 = vpow2.f32 %v433_v58 }
 0x2b2   : > { %v660_v59 = vpop.eup %659 }
 0x2b3   : > { %v435_v60 = vsel %vm324_vm3, %v660_v59, 0.0 }
 0x2b4   : > { %436 = vadd.xlane.f32.xlu0 %v435_v60 }
 0x2c8   : > { %374 = vrot.lane.b32.xlu0 %v313_v38, %s733_s9  ;;  %s528_s9 = sshll.u32 %s242_s29, 4  ;;  %s529_s9 = int_to_ptr.vmem [resolvable:$true] %s528_s9 }
 0x319   : > { %v358_v61 = vpop.xlane.xlu1 %357 }
 0x31a   : > { %661 = vrcp.f32 %v358_v61  ;;  %v370_v6 = vand.u32 2147483648, %v358_v61  ;;  %vm364_vm6 = vweird.f32 %v358_v61  ;;  %v368_v8 = vand.u32 2147483647, %v358_v61 }
 0x31c   : > { %v371_v11 = vor.u32 1.1754944e-38, %v370_v6  ;;  %vm369_vm8 = vcmp.eq.f32.partialorder %v368_v8, 8.507059e+37 }
 0x320   : > { %v662_v62 = vpop.eup %661 }
 0x321   : > { %v360_v63 = vmul.f32 %v662_v62, %v358_v61  ;;  %vm365_vm5 = vweird.f32 %v662_v62 }
 0x322   : > { %vm366_vm7 = vmor %vm364_vm6, %vm365_vm5 }
 0x323   : > { %v361_v1 = vsub.f32 1.0, %v360_v63 }
 0x325   : > { %v362_v2 = vmul.f32 %v662_v62, %v361_v1 }
 0x327   : > { %v437_v0 = vpop.xlane.xlu0 %436  ;;  %v363_v5 = vadd.f32 %v662_v62, %v362_v2 }
 0x328   : > { %663 = vrcp.f32 %v437_v0  ;;  %v449_v14 = vand.u32 2147483648, %v437_v0  ;;  %vm443_vm10 = vweird.f32 %v437_v0  ;;  %v447_v15 = vand.u32 2147483647, %v437_v0 }
 0x329   : > { %v367_v10 = vsel %vm366_vm7, %v662_v62, %v363_v5 }
 0x32a   : > { %v372_v12 = vsel %vm369_vm8, %v371_v11, %v367_v10  ;;  %v450_v20 = vor.u32 1.1754944e-38, %v449_v14  ;;  %vm448_vm12 = vcmp.eq.f32.partialorder %v447_v15, 8.507059e+37 }
 0x32b   : > { %v373_v17 = vmul.f32 %v658_v54, %v372_v12 }
 0x32e   : > { %v664_v3 = vpop.eup %663 }
 0x32f   : > { %v439_v4 = vmul.f32 %v664_v3, %v437_v0  ;;  %vm444_vm9 = vweird.f32 %v664_v3 }
 0x330   : > { %vm445_vm11 = vmor %vm443_vm10, %vm444_vm9 }
 0x331   : > { %v440_v7 = vsub.f32 1.0, %v439_v4 }
 0x333   : > { %v441_v9 = vmul.f32 %v664_v3, %v440_v7 }
 0x335   : > { %v442_v13 = vadd.f32 %v664_v3, %v441_v9 }
 0x337   : > { %v446_v19 = vsel %vm445_vm11, %v664_v3, %v442_v13 }
 0x338   : > { %v451_v21 = vsel %vm448_vm12, %v450_v20, %v446_v19 }
 0x339   : > { %v452_v22 = vmul.f32 %v660_v59, %v451_v21 }
 0x33a   : > { %v375_v16 = vpop.permute.xlu0 %374 }
 0x33b   : > { %395 = vmatpush.msra.mxu2 %v375_v16 }
 0x33c   : > { %598 = vmatmul.msk.f32.vlgmr.msra.gmra.mxu2 %vm324_vm3, %v373_v17 }
 0x33d   : > { %474 = vmatpush.msrb.mxu2 %v454_v18 }
 0x344   : > { %601 = vmatmul.msk.f32.vlgmr.msrb.gmra.mxu2 %vm324_vm3, %v452_v22 }
 0x3bf   : > { %v397_v25 = vpop.f32.mrf.mxu2 }
 0x3c7   : > { %v476_v26 = vpop.f32.mrf.mxu2 }
 0x3c8   : > { %480 = vrot.lane.b32.xlu0 %v476_v26, %s734_s14 }
 0x43a   : > { %v481_v27 = vpop.permute.xlu0 %480 }
 0x43b   : > { %v483_v28 = vsel %vm324_vm3, %v397_v25, %v481_v27 }
 0x43c   : > { %602 = vmatmul.msk.f32.vlgmr.msrb.gmra.mxu1 %vm490_vm13, %v483_v28 }
 0x4b9   : > { %v511_v30 = vpop.f32.mrf.mxu1 }
 0x4ba   : > { %v512_v31 = vadd.f32 %v654_v29, %v511_v30 }
 0x4bc   : > { %514 = vst [vmem:[%s242_s29] sm:$0xff] %v512_v31 }
 0x4bd   : > { %692 = shalt.err (!%p689_p3)
}
 0x4be   : > { %607 = dma.vmem_to_hbm [thread:$0]  (%p808_p5), %s529_s9, 128, %s531_s10, %s516_s11  }
 0x4bf PF: > { %p613_p4 = scmp.ge.s32.totalorder %s727_s24, 2  ;;  %s542_s15 = sand.u32 1, %s715_s21  }
 0x4c0   : > { %s543_s19 = scalar_lea.sflag [#allocation3], %s542_s15 }
 0x4c1   : > { %p610_p7 = pnand %p613_p4, %p812_p6 }
 0x4c3   : > { %p611_p8 = pneg %p610_p7 }
 0x4c5   : > { %710 = dma.done.wait (%p611_p8), %s543_s19, 128  }
 0x4c6   : > { %712 = vsyncadd (%p611_p8), %s543_s19, 4294967168  ;;  %p16_p9 = scmp.ge.s32.totalorder %s795_s27, 4   ;;  %s938_s21 = smov %s719_s22 }
 0x4c7   : > { %s939_s22 = smov %s723_s23  ;;  %s940_s23 = smov %s806_s30 }
 0x4c8   : > { %s941_s24 = smov %s795_s27  ;;  %18 = sbr.rel (!%p16_p9) target bundleno = 3 (0x3), region = 79 }
 0x4cd   :  { %549 = vsyncpa [#allocation3], 1 }
 0x4ce   :  { %551 = vsyncpa [#allocation3 + $0x1], 1 }

</bundles_post_ra>
